<compile_context>
chip_gen: v7x
topology: tpu7x:2x2x1
jax: 0.10.0
libtpu: 0.0.40
codegen_flags: <defaults>
</compile_context>

<pallas_src>
import jax
import jax.numpy as jnp
import numpy as np
from jax.experimental import pallas as pl
from jax.experimental.pallas import tpu as pltpu

NEG_SLOPE = 0.01   # nn.LeakyReLU default negative_slope
BN_EPS = 1e-5      # nn.BatchNorm1d default eps


def _rml_kernel(x_ref,
                w1_ref, s1_ref, c1_ref,
                w2_ref, s2_ref, c2_ref,
                w3_ref, rw_ref, c3_ref,
                o_ref):
    bt, few, d_in = x_ref.shape

    # (Bt, few, D_in) -> (Bt*few, D_in) so the MXU sees a fat M dimension.
    h = x_ref[...].reshape(bt * few, d_in)                       # bf16 activations

    # fc block 1: Linear + BN(eval) folded -> LeakyReLU   (Dropout = identity)
    h = jnp.dot(h, w1_ref[...], preferred_element_type=jnp.float32)
    h = h.reshape(bt, few, -1) * s1_ref[...] + c1_ref[...]       # (few,1)/(few,D1) bcast
    h = jnp.maximum(h, NEG_SLOPE * h)
    h = h.reshape(bt * few, -1)

    # fc block 2
    h = jnp.dot(h.astype(jnp.bfloat16), w2_ref[...],
                preferred_element_type=jnp.float32)
    h = h.reshape(bt, few, -1) * s2_ref[...] + c2_ref[...]
    h = jnp.maximum(h, NEG_SLOPE * h)                            # (Bt, few, D2)

    # out_fc with the mean over `few` hoisted ahead of the linear:
    #   mean_f[(h@W3 + b3)*s3 + t3] == (sum_f (s3/few)*h) @ W3 + c3
    hbar = jnp.sum(h * rw_ref[...], axis=1)                      # (Bt, D2)
    out = jnp.dot(hbar.astype(jnp.bfloat16), w3_ref[...],
                  preferred_element_type=jnp.float32) + c3_ref[...]
    o_ref[...] = out                                             # (Bt, out) dense store


def _choose_batch_tile(B, few, max_rows=512):
    """Largest Bt dividing B with Bt*few <= max_rows.

    Single grid step whenever the whole batch fits the row cap (grid steps are a
    serial loop on v5e/v6e; splitting tiny work on v7x loses more to per-step
    overhead than the 2-TC shard gains).  Prefer Bt % 8 == 0 so the (Bt, out)
    output store is sublane-dense."""
    candidates = [bt for bt in range(1, B + 1)
                  if B % bt == 0 and bt * few <= max_rows]
    if not candidates:
        return 1
    mult8 = [bt for bt in candidates if bt % 8 == 0]
    return max(mult8) if mult8 else max(candidates)


def relation_meta_learner_forward(x, layers, out_size, batch_tile=None):
    """x: (B, few, D_in) float32.
    layers: 3 tuples (W(Din,Dout), bias(1,Dout), bn_scale(few,1), bn_shift(few,1))
    with BN already folded to eval-mode scale/shift. Returns (B, 1, out_size)."""
    B, few, d_in = x.shape
    assert len(layers) == 3, "kernel is specialized for 2 hidden blocks + out_fc"

    bt = batch_tile or _choose_batch_tile(B, few)
    assert B % bt == 0
    n_steps = B // bt

    # Only x changes per grid step; ship it in bf16 (the MXU sees bf16 anyway).
    x_bf = x.astype(jnp.bfloat16)

    def full_spec(arr):
        nd = arr.ndim
        return pl.BlockSpec(arr.shape, lambda b, _nd=nd: (0,) * _nd)

    in_specs = [pl.BlockSpec((bt, few, d_in), lambda b: (b, 0, 0))]
    operands = [x_bf]
    const_bytes = 0

    # Hidden blocks: fold Linear bias + BN affine. Scale stays (few, 1) — the
    # lane broadcast happens in-kernel instead of inflating DMA/VMEM by d_out.
    for (w, bias, scale, shift) in layers[:2]:
        assert scale.shape == (few, 1) and shift.shape == (few, 1)
        w_bf = w.astype(jnp.bfloat16)
        s = scale.astype(jnp.float32)                             # (few, 1)
        c = (bias * scale + shift).astype(jnp.float32)            # (few, d_out)
        for p in (w_bf, s, c):
            in_specs.append(full_spec(p))
            operands.append(p)
            const_bytes += p.size * p.dtype.itemsize

    # out_fc: hoist the mean over `few` ahead of the linear. Valid only because
    # the BN affine is per-`few` (shape (few, 1)) and broadcast across features.
    w3, b3, s3, t3 = layers[2]
    assert s3.shape == (few, 1) and t3.shape == (few, 1), \
        "out_fc mean-hoist fold requires per-`few` BN affine of shape (few, 1)"
    w3_bf = w3.astype(jnp.bfloat16)
    rw = (s3 / few).astype(jnp.float32)                           # (few, 1)
    c3 = (b3 * jnp.mean(s3) + jnp.mean(t3)).astype(jnp.float32)   # (1, out)
    for p in (w3_bf, rw, c3):
        in_specs.append(full_spec(p))
        operands.append(p)
        const_bytes += p.size * p.dtype.itemsize

    out_spec = pl.BlockSpec((bt, out_size), lambda b: (b, 0))

    # Advisory cost hint: this kernel is tiny and overhead-bound; let XLA
    # schedule surrounding ops around it.
    d1 = layers[0][0].shape[1]
    d2 = layers[1][0].shape[1]
    flops = 2 * B * few * (d_in * d1 + d1 * d2) + 2 * B * d2 * out_size
    bytes_accessed = x_bf.size * 2 + const_bytes + B * out_size * 4
    cost = pl.CostEstimate(flops=flops, transcendentals=0,
                           bytes_accessed=bytes_accessed)

    out = pl.pallas_call(
        _rml_kernel,
        out_shape=jax.ShapeDtypeStruct((B, out_size), jnp.float32),
        grid_spec=pltpu.PrefetchScalarGridSpec(
            num_scalar_prefetch=0,
            grid=(n_steps,),
            in_specs=in_specs,
            out_specs=out_spec,
        ),
        compiler_params=pltpu.CompilerParams(
            dimension_semantics=("parallel",)),
        cost_estimate=cost,
    )(*operands)

    return out.reshape(B, 1, out_size)


def _reference(x, layers):
    """Pure-JAX f32 reference of the same (eval-mode) forward pass."""
    h = x
    n = len(layers)
    for i, (w, bias, scale, shift) in enumerate(layers):
        h = jnp.einsum("bfd,de->bfe", h, w) + bias[None]       # Linear
        h = h * scale[None] + shift[None]                      # BN (eval, folded)
        if i < n - 1:
            h = jnp.where(h > 0, h, NEG_SLOPE * h)             # LeakyReLU
            # Dropout: identity in eval mode
    h = jnp.mean(h, axis=1)
    return h.reshape(x.shape[0], 1, h.shape[-1])


def _make_params(key, few, dims):
    """dims = [d_in, h1, h2, out]. Returns list of folded layer params."""
    layers = []
    for i in range(1, len(dims)):
        d_in, d_out = dims[i - 1], dims[i]
        key, kw, kb, kg, kbe, km, kv = jax.random.split(key, 7)
        w = jax.random.normal(kw, (d_in, d_out), jnp.float32) * 0.05
        b = jax.random.normal(kb, (1, d_out), jnp.float32) * 0.05
        gamma = 1.0 + 0.1 * jax.random.normal(kg, (few,), jnp.float32)
        beta = 0.1 * jax.random.normal(kbe, (few,), jnp.float32)
        r_mean = 0.1 * jax.random.normal(km, (few,), jnp.float32)
        r_var = jnp.abs(1.0 + 0.1 * jax.random.normal(kv, (few,), jnp.float32))
        scale = (gamma / jnp.sqrt(r_var + BN_EPS)).reshape(few, 1)
        shift = (beta - r_mean * gamma / jnp.sqrt(r_var + BN_EPS)).reshape(few, 1)
        layers.append((w, b, scale, shift))
    return layers


if __name__ == "__main__":
    # Small shapes consistent with the module:
    #   few=8, embed_size=64 -> input dim 2*embed_size=128,
    #   hidden_size=[256, 128], out_size=128, batch=8.
    #   _choose_batch_tile picks Bt=8 -> a single grid step of (64, D) matmuls.
    B, FEW, EMBED = 8, 8, 64
    D_IN = 2 * EMBED
    HIDDEN = [256, 128]
    OUT = 128
    dims = [D_IN] + HIDDEN + [OUT]

    key = jax.random.PRNGKey(0)
    key, kx = jax.random.split(key)
    x = jax.random.normal(kx, (B, FEW, D_IN), jnp.float32)
    layers = _make_params(key, FEW, dims)

    out = relation_meta_learner_forward(x, layers, OUT)
    out = jax.block_until_ready(out)

    ref = jax.block_until_ready(_reference(x, layers))
    # bf16 MXU inputs -> loosened tolerance vs. the f32 reference.
    np.testing.assert_allclose(np.asarray(out), np.asarray(ref), rtol=3e-2, atol=3e-2)
    assert out.shape == (B, 1, OUT)

    print("KERNEL_OK")
</pallas_src>

<mosaic_0001>
module attributes {stable_mosaic.version = 11 : i64} {
  func.func @_rml_kernel(%arg0: i32, %arg1: memref<8x8x128xbf16, #tpu.memory_space<vmem>>, %arg2: memref<128x256xbf16, #tpu.memory_space<vmem>>, %arg3: memref<8x1xf32, #tpu.memory_space<vmem>>, %arg4: memref<8x256xf32, #tpu.memory_space<vmem>>, %arg5: memref<256x128xbf16, #tpu.memory_space<vmem>>, %arg6: memref<8x1xf32, #tpu.memory_space<vmem>>, %arg7: memref<8x128xf32, #tpu.memory_space<vmem>>, %arg8: memref<128x128xbf16, #tpu.memory_space<vmem>>, %arg9: memref<8x1xf32, #tpu.memory_space<vmem>>, %arg10: memref<1x128xf32, #tpu.memory_space<vmem>>, %arg11: memref<8x128xf32, #tpu.memory_space<vmem>>) attributes {dimension_semantics = [#tpu.dimension_semantics<parallel>], iteration_bounds = array<i64: 1>, scalar_prefetch = 0 : i64, scratch_operands = 0 : i64, tpu.core_type = #tpu.core_type<tc>, window_params = [{transform_indices = @transform_0, window_bounds = array<i64: 8, 8, 128>}, {pipeline_mode = #tpu.pipeline_mode<synchronous>, transform_indices = @transform_1, window_bounds = array<i64: 128, 256>}, {pipeline_mode = #tpu.pipeline_mode<synchronous>, transform_indices = @transform_2, window_bounds = array<i64: 8, 1>}, {pipeline_mode = #tpu.pipeline_mode<synchronous>, transform_indices = @transform_3, window_bounds = array<i64: 8, 256>}, {pipeline_mode = #tpu.pipeline_mode<synchronous>, transform_indices = @transform_4, window_bounds = array<i64: 256, 128>}, {pipeline_mode = #tpu.pipeline_mode<synchronous>, transform_indices = @transform_5, window_bounds = array<i64: 8, 1>}, {pipeline_mode = #tpu.pipeline_mode<synchronous>, transform_indices = @transform_6, window_bounds = array<i64: 8, 128>}, {pipeline_mode = #tpu.pipeline_mode<synchronous>, transform_indices = @transform_7, window_bounds = array<i64: 128, 128>}, {pipeline_mode = #tpu.pipeline_mode<synchronous>, transform_indices = @transform_8, window_bounds = array<i64: 8, 1>}, {pipeline_mode = #tpu.pipeline_mode<synchronous>, transform_indices = @transform_9, window_bounds = array<i64: 1, 128>}, {transform_indices = @transform_10, window_bounds = array<i64: 8, 128>}]} {
    %c0 = arith.constant 0 : index
    %c0_0 = arith.constant 0 : index
    %c0_1 = arith.constant 0 : index
    %0 = vector.load %arg1[%c0, %c0_0, %c0_1] : memref<8x8x128xbf16, #tpu.memory_space<vmem>>, vector<8x8x128xbf16>
    %1 = vector.shape_cast %0 : vector<8x8x128xbf16> to vector<64x128xbf16>
    %c0_2 = arith.constant 0 : index
    %c0_3 = arith.constant 0 : index
    %2 = vector.load %arg2[%c0_2, %c0_3] : memref<128x256xbf16, #tpu.memory_space<vmem>>, vector<128x256xbf16>
    %cst = arith.constant dense<0.000000e+00> : vector<64x256xf32>
    %3 = tpu.matmul %1, %2, %cst {dimension_numbers = #tpu.dot_dimension_numbers<[1], [0], [0], [1], [0, 0, 1, 1], [], []>} : vector<64x128xbf16>, vector<128x256xbf16>, vector<64x256xf32> -> vector<64x256xf32>
    %4 = vector.shape_cast %3 : vector<64x256xf32> to vector<8x8x256xf32>
    %c0_4 = arith.constant 0 : index
    %c0_5 = arith.constant 0 : index
    %5 = vector.load %arg3[%c0_4, %c0_5] : memref<8x1xf32, #tpu.memory_space<vmem>>, vector<8x1xf32>
    %6 = vector.shape_cast %5 : vector<8x1xf32> to vector<1x8x1xf32>
    %7 = vector.broadcast %6 : vector<1x8x1xf32> to vector<8x8x256xf32>
    %8 = arith.mulf %4, %7 : vector<8x8x256xf32>
    %c0_6 = arith.constant 0 : index
    %c0_7 = arith.constant 0 : index
    %9 = vector.load %arg4[%c0_6, %c0_7] : memref<8x256xf32, #tpu.memory_space<vmem>>, vector<8x256xf32>
    %10 = vector.shape_cast %9 : vector<8x256xf32> to vector<1x8x256xf32>
    %11 = vector.broadcast %10 : vector<1x8x256xf32> to vector<8x8x256xf32>
    %12 = arith.addf %8, %11 : vector<8x8x256xf32>
    %cst_8 = arith.constant 0.00999999977 : f32
    %13 = vector.broadcast %cst_8 : f32 to vector<8x8x256xf32>
    %14 = arith.mulf %13, %12 : vector<8x8x256xf32>
    %15 = arith.maximumf %12, %14 : vector<8x8x256xf32>
    %16 = vector.shape_cast %15 : vector<8x8x256xf32> to vector<64x256xf32>
    %17 = arith.truncf %16 : vector<64x256xf32> to vector<64x256xbf16>
    %c0_9 = arith.constant 0 : index
    %c0_10 = arith.constant 0 : index
    %18 = vector.load %arg5[%c0_9, %c0_10] : memref<256x128xbf16, #tpu.memory_space<vmem>>, vector<256x128xbf16>
    %cst_11 = arith.constant dense<0.000000e+00> : vector<64x128xf32>
    %19 = tpu.matmul %17, %18, %cst_11 {dimension_numbers = #tpu.dot_dimension_numbers<[1], [0], [0], [1], [0, 0, 1, 1], [], []>} : vector<64x256xbf16>, vector<256x128xbf16>, vector<64x128xf32> -> vector<64x128xf32>
    %20 = vector.shape_cast %19 : vector<64x128xf32> to vector<8x8x128xf32>
    %c0_12 = arith.constant 0 : index
    %c0_13 = arith.constant 0 : index
    %21 = vector.load %arg6[%c0_12, %c0_13] : memref<8x1xf32, #tpu.memory_space<vmem>>, vector<8x1xf32>
    %22 = vector.shape_cast %21 : vector<8x1xf32> to vector<1x8x1xf32>
    %23 = vector.broadcast %22 : vector<1x8x1xf32> to vector<8x8x128xf32>
    %24 = arith.mulf %20, %23 : vector<8x8x128xf32>
    %c0_14 = arith.constant 0 : index
    %c0_15 = arith.constant 0 : index
    %25 = vector.load %arg7[%c0_14, %c0_15] : memref<8x128xf32, #tpu.memory_space<vmem>>, vector<8x128xf32>
    %26 = vector.shape_cast %25 : vector<8x128xf32> to vector<1x8x128xf32>
    %27 = vector.broadcast %26 : vector<1x8x128xf32> to vector<8x8x128xf32>
    %28 = arith.addf %24, %27 : vector<8x8x128xf32>
    %cst_16 = arith.constant 0.00999999977 : f32
    %29 = vector.broadcast %cst_16 : f32 to vector<8x8x128xf32>
    %30 = arith.mulf %29, %28 : vector<8x8x128xf32>
    %31 = arith.maximumf %28, %30 : vector<8x8x128xf32>
    %c0_17 = arith.constant 0 : index
    %c0_18 = arith.constant 0 : index
    %32 = vector.load %arg9[%c0_17, %c0_18] : memref<8x1xf32, #tpu.memory_space<vmem>>, vector<8x1xf32>
    %33 = vector.shape_cast %32 : vector<8x1xf32> to vector<1x8x1xf32>
    %34 = vector.broadcast %33 : vector<1x8x1xf32> to vector<8x8x128xf32>
    %35 = arith.mulf %31, %34 : vector<8x8x128xf32>
    %cst_19 = arith.constant dense<0.000000e+00> : vector<8x128xf32>
    %36 = vector.multi_reduction <add>, %35, %cst_19 [1] : vector<8x8x128xf32> to vector<8x128xf32>
    %37 = arith.truncf %36 : vector<8x128xf32> to vector<8x128xbf16>
    %c0_20 = arith.constant 0 : index
    %c0_21 = arith.constant 0 : index
    %38 = vector.load %arg8[%c0_20, %c0_21] : memref<128x128xbf16, #tpu.memory_space<vmem>>, vector<128x128xbf16>
    %cst_22 = arith.constant dense<0.000000e+00> : vector<8x128xf32>
    %39 = tpu.matmul %37, %38, %cst_22 {dimension_numbers = #tpu.dot_dimension_numbers<[1], [0], [0], [1], [0, 0, 1, 1], [], []>} : vector<8x128xbf16>, vector<128x128xbf16>, vector<8x128xf32> -> vector<8x128xf32>
    %c0_23 = arith.constant 0 : index
    %c0_24 = arith.constant 0 : index
    %40 = vector.load %arg10[%c0_23, %c0_24] : memref<1x128xf32, #tpu.memory_space<vmem>>, vector<1x128xf32>
    %41 = vector.broadcast %40 : vector<1x128xf32> to vector<8x128xf32>
    %42 = arith.addf %39, %41 : vector<8x128xf32>
    %c0_25 = arith.constant 0 : index
    %c0_26 = arith.constant 0 : index
    %43 = vector.load %arg11[%c0_25, %c0_26] : memref<8x128xf32, #tpu.memory_space<vmem>>, vector<8x128xf32>
    tpu.vector_store %arg11[%c0_25, %c0_26], %42 {strides = array<i32>} : memref<8x128xf32, #tpu.memory_space<vmem>>, vector<8x128xf32>,
    return
  }
  func.func @transform_0(%arg0: i32) -> (i32, i32, i32) {
    %c0_i32 = arith.constant 0 : i32
    %c0_i32_0 = arith.constant 0 : i32
    %c0_i32_1 = arith.constant 0 : i32
    return %arg0, %c0_i32, %c0_i32_0 : i32, i32, i32
  }
  func.func @transform_1(%arg0: i32) -> (i32, i32) {
    %c0_i32 = arith.constant 0 : i32
    %c0_i32_0 = arith.constant 0 : i32
    %c0_i32_1 = arith.constant 0 : i32
    return %c0_i32, %c0_i32_0 : i32, i32
  }
  func.func @transform_2(%arg0: i32) -> (i32, i32) {
    %c0_i32 = arith.constant 0 : i32
    %c0_i32_0 = arith.constant 0 : i32
    %c0_i32_1 = arith.constant 0 : i32
    return %c0_i32, %c0_i32_0 : i32, i32
  }
  func.func @transform_3(%arg0: i32) -> (i32, i32) {
    %c0_i32 = arith.constant 0 : i32
    %c0_i32_0 = arith.constant 0 : i32
    %c0_i32_1 = arith.constant 0 : i32
    return %c0_i32, %c0_i32_0 : i32, i32
  }
  func.func @transform_4(%arg0: i32) -> (i32, i32) {
    %c0_i32 = arith.constant 0 : i32
    %c0_i32_0 = arith.constant 0 : i32
    %c0_i32_1 = arith.constant 0 : i32
    return %c0_i32, %c0_i32_0 : i32, i32
  }
  func.func @transform_5(%arg0: i32) -> (i32, i32) {
    %c0_i32 = arith.constant 0 : i32
    %c0_i32_0 = arith.constant 0 : i32
    %c0_i32_1 = arith.constant 0 : i32
    return %c0_i32, %c0_i32_0 : i32, i32
  }
  func.func @transform_6(%arg0: i32) -> (i32, i32) {
    %c0_i32 = arith.constant 0 : i32
    %c0_i32_0 = arith.constant 0 : i32
    %c0_i32_1 = arith.constant 0 : i32
    return %c0_i32, %c0_i32_0 : i32, i32
  }
  func.func @transform_7(%arg0: i32) -> (i32, i32) {
    %c0_i32 = arith.constant 0 : i32
    %c0_i32_0 = arith.constant 0 : i32
    %c0_i32_1 = arith.constant 0 : i32
    return %c0_i32, %c0_i32_0 : i32, i32
  }
  func.func @transform_8(%arg0: i32) -> (i32, i32) {
    %c0_i32 = arith.constant 0 : i32
    %c0_i32_0 = arith.constant 0 : i32
    %c0_i32_1 = arith.constant 0 : i32
    return %c0_i32, %c0_i32_0 : i32, i32
  }
  func.func @transform_9(%arg0: i32) -> (i32, i32) {
    %c0_i32 = arith.constant 0 : i32
    %c0_i32_0 = arith.constant 0 : i32
    %c0_i32_1 = arith.constant 0 : i32
    return %c0_i32, %c0_i32_0 : i32, i32
  }
  func.func @transform_10(%arg0: i32) -> (i32, i32) {
    %c0_i32 = arith.constant 0 : i32
    %c0_i32_0 = arith.constant 0 : i32
    return %arg0, %c0_i32 : i32, i32
  }
}

</mosaic_0001>

<bundles_post_ra>
// kernel: tpu_custom_call.1
= control target key start
LH: loop header
LB: loop body
LE: loop exit
PB: predicated region body
PF: predicated region fallthrough
CT: control target
= control target key end

     0   :  { %15 = vsyncpa [#allocation3], 0  ;;  %s1372_s0 = inlined_call_operand.hbm [shape: bf16[8,8,128], index: 0, kind: input, shape index: {}]   ;;  %s1373_s1 = inlined_call_operand.hbm [shape: bf16[128,256], index: 1, kind: input, shape index: {}]   ;;  %s1374_s2 = inlined_call_operand.vmem [shape: f32[8,1], index: 2, kind: input, shape index: {}]   ;;  %s1375_s3 = inlined_call_operand.vmem [shape: f32[8,256], index: 3, kind: input, shape index: {}]   ;;  %s1376_s4 = inlined_call_operand.hbm [shape: bf16[256,128], index: 4, kind: input, shape index: {}]   ;;  %s1377_s5 = inlined_call_operand.vmem [shape: f32[8,1], index: 5, kind: input, shape index: {}]   ;;  %s1378_s6 = inlined_call_operand.vmem [shape: f32[8,128], index: 6, kind: input, shape index: {}]   ;;  %s1379_s7 = inlined_call_operand.hbm [shape: bf16[128,128], index: 7, kind: input, shape index: {}]   ;;  %s1380_s8 = inlined_call_operand.vmem [shape: f32[8,1], index: 8, kind: input, shape index: {}]   ;;  %s1381_s9 = inlined_call_operand.vmem [shape: f32[1,128], index: 9, kind: input, shape index: {}]   ;;  %s1382_s10 = inlined_call_operand.hbm [shape: f32[8,128], index: 10, kind: output, shape index: {}]  }
   0x1   :  { %16 = vsyncpa [#allocation6], 0 }
   0x2   :  { %17 = vsyncpa [#allocation9], 0 }
   0x3   :  { %18 = vsyncpa [#allocation4], 0  ;;  %s1134_s13 = smov [#allocation5]   ;;  %s1016_s17 = scalar_lea.hbm %s1373_s1, 2048 }
   0x4   :  { %s36_s14 = sshll.u32 %s1134_s13, 4  ;;  %p1017_p0 = scmp.ne.s32.totalorder %s1373_s1, %s1016_s17  ;;  %s37_s14 = int_to_ptr.vmem [resolvable:$true] %s36_s14 }
   0x5   :  { %p1020_p1 = scmp.lt.u32.totalorder %s1016_s17, %s1373_s1 }
   0x7   :  { %p1022_p2 = pnand %p1020_p1, %p1017_p0 }
   0x9   :  { %1025 = shalt.err (!%p1022_p2)
}
   0xa   :  { %s1026_s22 = scalar_lea.vmem %s37_s14, 2048  ;;  %p1031_p4 = scmp.lt.s32.totalorder %s37_s14, %s37_s14 }
   0xb   :  { %p1027_p3 = scmp.ne.s32.totalorder %s37_s14, %s1026_s22  ;;  %p1032_p5 = scmp.lt.s32.totalorder %s1026_s22, %s1026_s22 }
   0xd   :  { %p1033_p6 = por %p1032_p5, %p1031_p4 }
   0xf   :  { %p1034_p7 = pnand %p1033_p6, %p1027_p3 }
  0x11   :  { %1037 = shalt.err (!%p1034_p7)
}
  0x12   :  { %s1135_s23 = smov 128   ;;  %s1136_s24 = smov 8  }
  0x13   :  { %42 = dma.hbm_to_vmem [thread:$0]  %s1373_s1, 2048, %s37_s14, [#allocation6], %s1135_s23, %s1135_s23, %s1136_s24  }
  0x14   :  { %s1137_s27 = smov [#allocation2]   ;;  %s1038_s11 = scalar_lea.hbm %s1372_s0, 512 }
  0x15   :  { %s24_s28 = sshll.u32 %s1137_s27, 4  ;;  %p1039_p8 = scmp.ne.s32.totalorder %s1372_s0, %s1038_s11  ;;  %s25_s28 = int_to_ptr.vmem [resolvable:$true] %s24_s28 }
  0x16   :  { %p1042_p9 = scmp.lt.u32.totalorder %s1038_s11, %s1372_s0 }
  0x18   :  { %p1044_p10 = pnand %p1042_p9, %p1039_p8 }
  0x1a   :  { %1047 = shalt.err (!%p1044_p10)
}
  0x1b   :  { %s1048_s17 = scalar_lea.vmem %s25_s28, 512  ;;  %p1053_p12 = scmp.lt.s32.totalorder %s25_s28, %s25_s28 }
  0x1c   :  { %p1049_p11 = scmp.ne.s32.totalorder %s25_s28, %s1048_s17  ;;  %p1054_p13 = scmp.lt.s32.totalorder %s1048_s17, %s1048_s17 }
  0x1e   :  { %p1055_p0 = por %p1054_p13, %p1053_p12 }
  0x20   :  { %p1056_p1 = pnand %p1055_p0, %p1049_p11 }
  0x22   :  { %1059 = shalt.err (!%p1056_p1)
}
  0x23   :  { %s1138_s1 = smov 64   ;;  %s1139_s14 = smov 4  }
  0x24   :  { %30 = dma.hbm_to_vmem [thread:$0]  %s1372_s0, 512, %s25_s28, [#allocation3], %s1138_s1, %s1138_s1, %s1139_s14  }
  0x25   :  { %s1140_s20 = smov [#allocation7]   ;;  %s1141_s22 = smov [#allocation8]  }
  0x26   :  { %s52_s21 = sshll.u32 %s1140_s20, 4  ;;  %s68_s23 = sshll.u32 %s1141_s22, 4  ;;  %s53_s21 = int_to_ptr.vmem [resolvable:$true] %s52_s21  ;;  %s1228_s23 = int_to_ptr.vmem [resolvable:$true] %s68_s23 }
  0x27   :  { %s1060_s26 = scalar_lea.hbm %s1376_s4, 2048 }
  0x28   :  { %p1061_p2 = scmp.ne.s32.totalorder %s1376_s4, %s1060_s26  ;;  %p1064_p3 = scmp.lt.u32.totalorder %s1060_s26, %s1376_s4 }
  0x2a   :  { %p1066_p4 = pnand %p1064_p3, %p1061_p2 }
  0x2c   :  { %1069 = shalt.err (!%p1066_p4)
}
  0x2d   :  { %s1070_s0 = scalar_lea.vmem %s53_s21, 2048  ;;  %p1075_p6 = scmp.lt.s32.totalorder %s53_s21, %s53_s21 }
  0x2e   :  { %p1071_p5 = scmp.ne.s32.totalorder %s53_s21, %s1070_s0  ;;  %p1076_p7 = scmp.lt.s32.totalorder %s1070_s0, %s1070_s0 }
  0x30   :  { %p1077_p8 = por %p1076_p7, %p1075_p6 }
  0x32   :  { %p1078_p9 = pnand %p1077_p8, %p1071_p5 }
  0x34   :  { %1081 = shalt.err (!%p1078_p9)
}
  0x35   :  { %58 = dma.hbm_to_vmem [thread:$0]  %s1376_s4, 2048, %s53_s21, [#allocation6], %s1138_s1, %s1138_s1, %s1139_s14  }
  0x36   :  { %s1082_s16 = scalar_lea.hbm %s1379_s7, 1024 }
  0x37   :  { %p1083_p10 = scmp.ne.s32.totalorder %s1379_s7, %s1082_s16  ;;  %p1086_p11 = scmp.lt.u32.totalorder %s1082_s16, %s1379_s7 }
  0x39   :  { %p1088_p12 = pnand %p1086_p11, %p1083_p10 }
  0x3b   :  { %1091 = shalt.err (!%p1088_p12)
}
  0x3c   :  { %s1092_s22 = scalar_lea.vmem %s1228_s23, 1024  ;;  %p1097_p0 = scmp.lt.s32.totalorder %s1228_s23, %s1228_s23 }
  0x3d   :  { %p1093_p13 = scmp.ne.s32.totalorder %s1228_s23, %s1092_s22  ;;  %p1098_p1 = scmp.lt.s32.totalorder %s1092_s22, %s1092_s22 }
  0x3f   :  { %p1099_p2 = por %p1098_p1, %p1097_p0 }
  0x41   :  { %p1100_p3 = pnand %p1099_p2, %p1093_p13 }
  0x43   :  { %1103 = shalt.err (!%p1100_p3)
}
  0x44   :  { %74 = dma.hbm_to_vmem [thread:$0]  %s1379_s7, 1024, %s1228_s23, [#allocation9], %s1138_s1, %s1138_s1, %s1139_s14  }
  0x45   :  { %1126 = dma.done.wait [#allocation3], 512  }
  0x46   :  { %1127 = vsyncadd [#allocation3], 4294966784 }
  0x47   :  { %1128 = dma.done.wait [#allocation6], 4096  }
  0x48   :  { %1129 = vsyncadd [#allocation6], 4294963200 }
  0x49   :  { %1130 = dma.done.wait [#allocation9], 1024  }
  0x4a   :  { %1131 = vsyncadd [#allocation9], 4294966272  ;;  %v1142_v0 = vmov 0   ;;  %v964_v1 = vld [vmem:[#allocation5 + $0x4] ss:$8 sps:$4 sm:$0xff]   ;;  %v996_v21 = vld [vmem:[#allocation7 + $0x50] sm:$0xff]  }
  0x4b   :  { %252 = vmatprep.mubr.bf16.mxu0 %v1142_v0  ;;  %962 = vset.pattern.permute.xlu0 %v1142_v0  ;;  %v966_v2 = vld [vmem:[#allocation5] ss:$8 sps:$4 sm:$0xff]   ;;  %v967_v3 = vld [vmem:[#allocation5 + $0x14] ss:$8 sps:$4 sm:$0xff]   ;;  %v969_v4 = vld [vmem:[#allocation5 + $0x10] ss:$8 sps:$4 sm:$0xff]  }
  0x4c   :  { %963 = vset.pattern.permute.xlu1 %v1142_v0  ;;  %220 = vmatprep.subr.bf16.mxu0 %v964_v1  ;;  %v970_v5 = vld [vmem:[#allocation5 + $0x24] ss:$8 sps:$4 sm:$0xff]   ;;  %v972_v6 = vld [vmem:[#allocation5 + $0x20] ss:$8 sps:$4 sm:$0xff]   ;;  %v973_v7 = vld [vmem:[#allocation5 + $0x34] ss:$8 sps:$4 sm:$0xff]  }
  0x4d   :  { %221 = vmatpush1.bf16.msra.mxu0 %v966_v2  ;;  %v975_v8 = vld [vmem:[#allocation5 + $0x30] ss:$8 sps:$4 sm:$0xff]   ;;  %v976_v9 = vld [vmem:[#allocation5 + $0x44] ss:$8 sps:$4 sm:$0xff]   ;;  %v978_v10 = vld [vmem:[#allocation5 + $0x40] ss:$8 sps:$4 sm:$0xff]  }
  0x4e   :  { %222 = vmatprep.subr.bf16.mxu0 %v967_v3  ;;  %v979_v11 = vld [vmem:[#allocation5 + $0x54] ss:$8 sps:$4 sm:$0xff]   ;;  %v293_v12 = vld [vmem:[%s1374_s2] sm:$0xff]  ;;  %v981_v15 = vld [vmem:[#allocation5 + $0x50] ss:$8 sps:$4 sm:$0xff]   ;;  %vm1144_vm0 = vmmov 0  }
  0x4f   :  { %296 = vperm.xlu0 %962, %v293_v12   ;;  %v566_v13 = vld [vmem:[%s1377_s5] sm:$0xff]  ;;  %v994_v17 = vld [vmem:[#allocation7 + $0x48] sm:$0xff]   ;;  %v985_v22 = vld [vmem:[#allocation5 + $0x74] ss:$8 sps:$4 sm:$0xff]   ;;  %vm714_vm1 = vcmask 1041409   ;;  %vm716_vm2 = vcmask 1042434  }
  0x50   :  { %v992_v14 = vld [vmem:[#allocation7 + $0x40] sm:$0xff]   ;;  %v995_v19 = vld [vmem:[#allocation7 + $0x8] sm:$0xff]   ;;  %v997_v23 = vld [vmem:[#allocation7 + $0x10] sm:$0xff]   ;;  %vm718_vm3 = vcmask 1043459   ;;  %vm720_vm4 = vcmask 1044484   ;;  %vm722_vm5 = vcmask 1045509  }
  0x51   :  { %223 = vmatpush1.bf16.msra.mxu0 %v969_v4  ;;  %v993_v16 = vld [vmem:[#allocation7] sm:$0xff]   ;;  %881 = vmatprep.subr.bf16.mxu1 %v992_v14  ;;  %v998_v24 = vld [vmem:[#allocation7 + $0x58] sm:$0xff]   ;;  %v989_v29 = vld [vmem:[#allocation2 + $0x8] sm:$0xff]   ;;  %vm724_vm6 = vcmask 1046534   ;;  %vm726_vm7 = vcmask 1047559   ;;  %s1145_s30 = smov [#allocation10]  }
  0x52   :  { %224 = vmatprep.subr.bf16.mxu0 %v970_v5  ;;  %v982_v18 = vld [vmem:[#allocation5 + $0x64] ss:$8 sps:$4 sm:$0xff]   ;;  %882 = vmatpush3.bf16.msra.mxu1 %v993_v16  ;;  %v984_v20 = vld [vmem:[#allocation5 + $0x60] ss:$8 sps:$4 sm:$0xff]   ;;  %v987_v25 = vld [vmem:[#allocation5 + $0x70] ss:$8 sps:$4 sm:$0xff]  }
  0x53   :  { %569 = vperm.xlu0 %962, %v566_v13   ;;  %883 = vmatprep.subr.bf16.mxu1 %v994_v17  ;;  %v999_v26 = vld [vmem:[#allocation7 + $0x18] sm:$0xff]   ;;  %v1000_v27 = vld [vmem:[#allocation7 + $0x60] sm:$0xff]   ;;  %v990_v30 = vld [vmem:[#allocation2 + $0x10] sm:$0xff]   ;;  %s825_s11 = sshll.u32 %s1145_s30, 4  ;;  %s826_s11 = int_to_ptr.vmem [resolvable:$true] %s825_s11 }
  0x54   :  { %v988_v28 = vld [vmem:[#allocation2] sm:$0xff]   ;;  %v991_v31 = vld [vmem:[#allocation2 + $0x18] sm:$0xff]   ;;  %v1002_v33 = vld [vmem:[#allocation7 + $0x68] sm:$0xff]   ;;  %s1104_s0 = scalar_lea.vmem %s826_s11, 128  ;;  %p1109_p5 = scmp.lt.s32.totalorder %s826_s11, %s826_s11 }
  0x55   :  { %225 = vmatpush1.bf16.msra.mxu0 %v972_v6  ;;  %v1001_v32 = vld [vmem:[#allocation7 + $0x20] sm:$0xff]   ;;  %v1003_v34 = vld [vmem:[#allocation7 + $0x28] sm:$0xff]   ;;  %v1004_v35 = vld [vmem:[#allocation7 + $0x70] sm:$0xff]   ;;  %p1105_p4 = scmp.ne.s32.totalorder %s826_s11, %s1104_s0  ;;  %p1110_p6 = scmp.lt.s32.totalorder %s1104_s0, %s1104_s0 }
  0x56   :  { %226 = vmatprep.subr.bf16.mxu0 %v973_v7  ;;  %884 = vmatpush3.bf16.msra.mxu1 %v995_v19  ;;  %v1005_v36 = vld [vmem:[#allocation7 + $0x30] sm:$0xff]   ;;  %v1006_v37 = vld [vmem:[#allocation7 + $0x78] sm:$0xff]   ;;  %v605_v39 = vld [vmem:[%s1380_s8] sm:$0xff] }
  0x57   :  { %885 = vmatprep.subr.bf16.mxu1 %v996_v21  ;;  %v1007_v38 = vld [vmem:[#allocation7 + $0x38] sm:$0xff]   ;;  %608 = vperm.xlu1 %963, %v605_v39   ;;  %v1285_v42 = vld [vmem:[%s1375_s3] sm:$0xff]  ;;  %v1291_v45 = vld [vmem:[%s1375_s3 + $0x8] sm:$0xff]  ;;  %p1111_p7 = por %p1110_p6, %p1109_p5 }
  0x59   :  { %227 = vmatpush1.bf16.msra.mxu0 %v975_v8  ;;  %p1112_p8 = pnand %p1111_p7, %p1105_p4 }
  0x5a   :  { %228 = vmatprep.subr.bf16.mxu0 %v976_v9  ;;  %886 = vmatpush3.bf16.msra.mxu1 %v997_v23 }
  0x5b   :  { %887 = vmatprep.subr.bf16.mxu1 %v998_v24 }
  0x5d   :  { %229 = vmatpush1.bf16.msra.mxu0 %v978_v10 }
  0x5e   :  { %230 = vmatprep.subr.bf16.mxu0 %v979_v11  ;;  %888 = vmatpush3.bf16.msra.mxu1 %v999_v26 }
  0x5f   :  { %889 = vmatprep.subr.bf16.mxu1 %v1000_v27 }
  0x61   :  { %231 = vmatpush1.bf16.msra.mxu0 %v981_v15 }
  0x62   :  { %232 = vmatprep.subr.bf16.mxu0 %v982_v18  ;;  %890 = vmatpush3.bf16.msra.mxu1 %v1001_v32 }
  0x63   :  { %891 = vmatprep.subr.bf16.mxu1 %v1002_v33 }
  0x65   :  { %233 = vmatpush1.bf16.msra.mxu0 %v984_v20 }
  0x66   :  { %234 = vmatprep.subr.bf16.mxu0 %v985_v22  ;;  %892 = vmatpush3.bf16.msra.mxu1 %v1003_v34 }
  0x67   :  { %893 = vmatprep.subr.bf16.mxu1 %v1004_v35 }
  0x69   :  { %235 = vmatpush1.bf16.msra.mxu0 %v987_v25 }
  0x6a   :  { %894 = vmatpush3.bf16.msra.mxu1 %v1005_v36 }
  0x6b   :  { %895 = vmatprep.subr.bf16.mxu1 %v1006_v37 }
  0x6c   :  { %253 = vmatmul.mubr.bf16.vlgmr.msra.gmra.mrb[0].mxu0 %v988_v28 }
  0x6d   :  { %262 = vmatprep.mubr.bf16.mxu0 %v1142_v0 }
  0x6e   :  { %896 = vmatpush3.bf16.msra.mxu1 %v1007_v38 }
  0x74   :  { %263 = vmatmul.mubr.bf16.gmra.mrb[4].mxu0 %v989_v29 }
  0x75   :  { %272 = vmatprep.mubr.bf16.mxu0 %v1142_v0 }
  0x7c   :  { %273 = vmatmul.mubr.bf16.gmra.mrb[8].mxu0 %v990_v30 }
  0x7d   :  { %282 = vmatprep.mubr.bf16.mxu0 %v1142_v0 }
  0x84   :  { %283 = vmatmul.mubr.bf16.gmra.mrb[12].mxu0 %v991_v31 }
  0xce   :  { %v1280_v40 = vpop.permute.xlu0 %296 }
 0x13f   :  { %v254_v41 = vpop.f32.mrb[0].mxu0 }
 0x140   :  { %v299_v43 = vmul.f32 %v1280_v40, %v254_v41  ;;  %v256_v44 = vpop.f32.mrb[1].mxu0 }
 0x141   :  { %v300_v46 = vmul.f32 %v1280_v40, %v256_v44  ;;  %v258_v47 = vpop.f32.mrb[2].mxu0 }
 0x142   :  { %v317_v48 = vadd.f32 %v1285_v42, %v299_v43  ;;  %v301_v49 = vmul.f32 %v1280_v40, %v258_v47  ;;  %v260_v50 = vpop.f32.mrb[3].mxu0 }
 0x143   :  { %v318_v51 = vadd.f32 %v1291_v45, %v300_v46  ;;  %v302_v52 = vmul.f32 %v1280_v40, %v260_v50 }
 0x144   :  { %v333_v53 = vmul.f32 0.01, %v317_v48  ;;  %v319_v54 = vadd.f32 %v1285_v42, %v301_v49 }
 0x145   :  { %v320_v55 = vadd.f32 %v1291_v45, %v302_v52  ;;  %v334_v56 = vmul.f32 0.01, %v318_v51 }
 0x146   :  { %v335_v57 = vmul.f32 0.01, %v319_v54  ;;  %v349_v60 = vmax.f32 %v317_v48, %v333_v53 }
 0x147   :  { %v264_v58 = vpop.f32.mrb[4].mxu0  ;;  %v336_v59 = vmul.f32 0.01, %v320_v55  ;;  %v350_v2 = vmax.f32 %v318_v51, %v334_v56 }
 0x148   :  { %v351_v61 = vmax.f32 %v319_v54, %v335_v57  ;;  %v303_v62 = vmul.f32 %v1280_v40, %v264_v58  ;;  %v266_v63 = vpop.f32.mrb[5].mxu0 }
 0x149   :  { %v304_v0 = vmul.f32 %v1280_v40, %v266_v63  ;;  %v268_v1 = vpop.f32.mrb[6].mxu0  ;;  %v352_v3 = vmax.f32 %v320_v55, %v336_v59 }
 0x14a   :  { %v321_v4 = vadd.f32 %v1285_v42, %v303_v62  ;;  %v305_v5 = vmul.f32 %v1280_v40, %v268_v1  ;;  %v270_v6 = vpop.f32.mrb[7].mxu0  ;;  %v365_v7 = vpack.c.bf16 %v351_v61, %v349_v60 }
 0x14b   :  { %v322_v8 = vadd.f32 %v1291_v45, %v304_v0  ;;  %v306_v9 = vmul.f32 %v1280_v40, %v270_v6  ;;  %v366_v10 = vpack.c.bf16 %v352_v3, %v350_v2  ;;  %v1143_v6 = vmov 0.0  }
 0x14c   :  { %v337_v11 = vmul.f32 0.01, %v321_v4  ;;  %v323_v12 = vadd.f32 %v1285_v42, %v305_v5  ;;  %930 = vmatprep.subr.bf16.mxu0 %v1143_v6  ;;  %946 = vmatprep.mubr.msk.bf16.mxu0 %vm1144_vm0, %v1143_v6 }
 0x14d   :  { %v338_v13 = vmul.f32 0.01, %v322_v8  ;;  %v324_v14 = vadd.f32 %v1291_v45, %v306_v9  ;;  %533 = vmatprep.mubr.bf16.mxu1 %v366_v10  ;;  %v1013_v9 = vld [vmem:[#allocation8 + $0x28] sm:$0xff]   ;;  %v1014_v10 = vld [vmem:[#allocation8 + $0x30] sm:$0xff]  }
 0x14e   :  { %v339_v15 = vmul.f32 0.01, %v323_v12  ;;  %534 = vmatmul.mubr.bf16.vlgmr.msra.gmra.mrb[0].mxu1 %v365_v7  ;;  %v353_v18 = vmax.f32 %v321_v4, %v337_v11  ;;  %v1011_v7 = vld [vmem:[#allocation8 + $0x18] sm:$0xff]  }
 0x14f   :  { %v340_v16 = vmul.f32 0.01, %v324_v14  ;;  %v274_v17 = vpop.f32.mrb[8].mxu0  ;;  %v354_v22 = vmax.f32 %v322_v8, %v338_v13  ;;  %v1012_v8 = vld [vmem:[#allocation8 + $0x20] sm:$0xff]   ;;  %v1015_v11 = vld [vmem:[#allocation8 + $0x38] sm:$0xff]  }
 0x150   :  { %v355_v19 = vmax.f32 %v323_v12, %v339_v15  ;;  %v307_v20 = vmul.f32 %v1280_v40, %v274_v17  ;;  %v276_v21 = vpop.f32.mrb[9].mxu0  ;;  %v1329_v17 = vld [vmem:[%s1378_s6] sm:$0xff] }
 0x151   :  { %v356_v23 = vmax.f32 %v324_v14, %v340_v16  ;;  %v308_v24 = vmul.f32 %v1280_v40, %v276_v21  ;;  %v278_v25 = vpop.f32.mrb[10].mxu0  ;;  %v1324_v16 = vpop.permute.xlu0 %569 }
 0x152   :  { %v325_v26 = vadd.f32 %v1285_v42, %v307_v20  ;;  %v309_v27 = vmul.f32 %v1280_v40, %v278_v25  ;;  %v280_v28 = vpop.f32.mrb[11].mxu0  ;;  %v367_v29 = vpack.c.bf16 %v355_v19, %v353_v18 }
 0x153   :  { %v326_v30 = vadd.f32 %v1291_v45, %v308_v24  ;;  %v310_v31 = vmul.f32 %v1280_v40, %v280_v28  ;;  %v368_v32 = vpack.c.bf16 %v356_v23, %v354_v22 }
 0x154   :  { %v341_v33 = vmul.f32 0.01, %v325_v26  ;;  %v327_v34 = vadd.f32 %v1285_v42, %v309_v27  ;;  %v1335_v27 = vpop.permute.xlu1 %608 }
 0x155   :  { %v342_v35 = vmul.f32 0.01, %v326_v30  ;;  %v328_v36 = vadd.f32 %v1291_v45, %v310_v31  ;;  %541 = vmatprep.mubr.bf16.mxu1 %v368_v32 }
 0x156   :  { %v343_v37 = vmul.f32 0.01, %v327_v34  ;;  %542 = vmatmul.mubr.bf16.gmra.mrb[4].mxu1 %v367_v29  ;;  %v357_v41 = vmax.f32 %v325_v26, %v341_v33 }
 0x157   :  { %v344_v38 = vmul.f32 0.01, %v328_v36  ;;  %v284_v39 = vpop.f32.mrb[12].mxu0  ;;  %v358_v47 = vmax.f32 %v326_v30, %v342_v35 }
 0x158   :  { %v359_v43 = vmax.f32 %v327_v34, %v343_v37  ;;  %v311_v44 = vmul.f32 %v1280_v40, %v284_v39  ;;  %v286_v46 = vpop.f32.mrb[13].mxu0 }
 0x159   :  { %v360_v48 = vmax.f32 %v328_v36, %v344_v38  ;;  %v312_v49 = vmul.f32 %v1280_v40, %v286_v46  ;;  %v288_v50 = vpop.f32.mrb[14].mxu0 }
 0x15a   :  { %v329_v51 = vadd.f32 %v1285_v42, %v311_v44  ;;  %v313_v52 = vmul.f32 %v1280_v40, %v288_v50  ;;  %v290_v53 = vpop.f32.mrb[15].mxu0  ;;  %v369_v54 = vpack.c.bf16 %v359_v43, %v357_v41 }
 0x15b   :  { %v330_v55 = vadd.f32 %v1291_v45, %v312_v49  ;;  %v314_v56 = vmul.f32 %v1280_v40, %v290_v53  ;;  %v370_v57 = vpack.c.bf16 %v360_v48, %v358_v47  ;;  %v1008_v40 = vld [vmem:[#allocation8] sm:$0xff]  }
 0x15c   :  { %v345_v58 = vmul.f32 0.01, %v329_v51  ;;  %v331_v59 = vadd.f32 %v1285_v42, %v313_v52  ;;  %931 = vmatpush3.bf16.msra.mxu0 %v1008_v40  ;;  %v1009_v42 = vld [vmem:[#allocation8 + $0x8] sm:$0xff]  }
 0x15d   :  { %v346_v60 = vmul.f32 0.01, %v330_v55  ;;  %v332_v61 = vadd.f32 %v1291_v45, %v314_v56  ;;  %549 = vmatprep.mubr.bf16.mxu1 %v370_v57  ;;  %932 = vmatprep.subr.bf16.mxu0 %v1143_v6  ;;  %v1010_v45 = vld [vmem:[#allocation8 + $0x10] sm:$0xff]  }
 0x15e   :  { %v347_v62 = vmul.f32 0.01, %v331_v59  ;;  %550 = vmatmul.mubr.bf16.gmra.mrb[8].mxu1 %v369_v54  ;;  %v361_v0 = vmax.f32 %v329_v51, %v345_v58 }
 0x15f   :  { %v348_v63 = vmul.f32 0.01, %v332_v61  ;;  %v362_v2 = vmax.f32 %v330_v55, %v346_v60 }
 0x160   :  { %v363_v1 = vmax.f32 %v331_v59, %v347_v62  ;;  %933 = vmatpush3.bf16.msra.mxu0 %v1009_v42 }
 0x161   :  { %v364_v3 = vmax.f32 %v332_v61, %v348_v63  ;;  %934 = vmatprep.subr.bf16.mxu0 %v1143_v6 }
 0x162   :  { %v371_v4 = vpack.c.bf16 %v363_v1, %v361_v0 }
 0x163   :  { %v372_v5 = vpack.c.bf16 %v364_v3, %v362_v2 }
 0x164   :  { %935 = vmatpush3.bf16.msra.mxu0 %v1010_v45 }
 0x165   :  { %557 = vmatprep.mubr.bf16.mxu1 %v372_v5  ;;  %936 = vmatprep.subr.bf16.mxu0 %v1143_v6 }
 0x166   :  { %558 = vmatmul.mubr.bf16.gmra.mrb[12].mxu1 %v371_v4 }
 0x168   :  { %937 = vmatpush3.bf16.msra.mxu0 %v1011_v7 }
 0x169   :  { %938 = vmatprep.subr.bf16.mxu0 %v1143_v6 }
 0x16c   :  { %939 = vmatpush3.bf16.msra.mxu0 %v1012_v8 }
 0x16d   :  { %940 = vmatprep.subr.bf16.mxu0 %v1143_v6 }
 0x170   :  { %941 = vmatpush3.bf16.msra.mxu0 %v1013_v9 }
 0x171   :  { %942 = vmatprep.subr.bf16.mxu0 %v1143_v6 }
 0x174   :  { %943 = vmatpush3.bf16.msra.mxu0 %v1014_v10 }
 0x175   :  { %944 = vmatprep.subr.bf16.mxu0 %v1143_v6 }
 0x178   :  { %945 = vmatpush3.bf16.msra.mxu0 %v1015_v11 }
 0x221   :  { %v897_v12 = vpop.f32.mrb[0].mxu1 }
 0x222   :  { %v898_v13 = vpop.f32.mrb[1].mxu1 }
 0x223   :  { %v899_v14 = vadd.f32 %v898_v13, %v897_v12  ;;  %v900_v15 = vpop.f32.mrb[2].mxu1 }
 0x224   :  { %v901_v18 = vpop.f32.mrb[3].mxu1 }
 0x225   :  { %v572_v19 = vmul.f32 %v899_v14, %v1324_v16  ;;  %v902_v20 = vadd.f32 %v901_v18, %v900_v15 }
 0x227   :  { %v581_v21 = vadd.f32 %v1329_v17, %v572_v19  ;;  %v573_v22 = vmul.f32 %v902_v20, %v1324_v16 }
 0x229   :  { %v589_v23 = vmul.f32 0.01, %v581_v21  ;;  %v582_v24 = vadd.f32 %v1329_v17, %v573_v22  ;;  %v903_v25 = vpop.f32.mrb[4].mxu1 }
 0x22a   :  { %v904_v26 = vpop.f32.mrb[5].mxu1 }
 0x22b   :  { %v597_v28 = vmax.f32 %v581_v21, %v589_v23  ;;  %v590_v29 = vmul.f32 0.01, %v582_v24  ;;  %v905_v30 = vadd.f32 %v904_v26, %v903_v25  ;;  %v906_v31 = vpop.f32.mrb[6].mxu1 }
 0x22c   :  { %v907_v32 = vpop.f32.mrb[7].mxu1 }
 0x22d   :  { %v598_v33 = vmax.f32 %v582_v24, %v590_v29  ;;  %v574_v34 = vmul.f32 %v905_v30, %v1324_v16  ;;  %v611_v35 = vmul.f32 %v1335_v27, %v597_v28  ;;  %v908_v36 = vadd.f32 %v907_v32, %v906_v31 }
 0x22f   :  { %v583_v37 = vadd.f32 %v1329_v17, %v574_v34  ;;  %v612_v38 = vmul.f32 %v1335_v27, %v598_v33  ;;  %v619_v39 = vrot.slane %v611_v35, 4  ;;  %v575_v41 = vmul.f32 %v908_v36, %v1324_v16 }
 0x231   :  { %v591_v43 = vmul.f32 0.01, %v583_v37  ;;  %v620_v44 = vadd.f32 %v619_v39, %v611_v35  ;;  %v625_v46 = vrot.slane %v612_v38, 4  ;;  %v584_v47 = vadd.f32 %v1329_v17, %v575_v41  ;;  %v909_v48 = vpop.f32.mrb[8].mxu1 }
 0x232   :  { %v910_v49 = vpop.f32.mrb[9].mxu1 }
 0x233   :  { %v599_v50 = vmax.f32 %v583_v37, %v591_v43  ;;  %v621_v51 = vrot.slane %v620_v44, 2  ;;  %v626_v52 = vadd.f32 %v625_v46, %v612_v38  ;;  %v592_v53 = vmul.f32 0.01, %v584_v47  ;;  %v912_v54 = vpop.f32.mrb[10].mxu1 }
 0x234   :  { %v911_v55 = vadd.f32 %v910_v49, %v909_v48  ;;  %v913_v56 = vpop.f32.mrb[11].mxu1 }
 0x235   :  { %v613_v57 = vmul.f32 %v1335_v27, %v599_v50  ;;  %v622_v58 = vadd.f32 %v621_v51, %v620_v44  ;;  %v627_v59 = vrot.slane %v626_v52, 2  ;;  %v600_v60 = vmax.f32 %v584_v47, %v592_v53 }
 0x236   :  { %v576_v61 = vmul.f32 %v911_v55, %v1324_v16  ;;  %v914_v62 = vadd.f32 %v913_v56, %v912_v54 }
 0x237   :  { %v623_v63 = vrot.slane %v622_v58, 1  ;;  %v628_v0 = vadd.f32 %v627_v59, %v626_v52  ;;  %v631_v1 = vrot.slane %v613_v57, 4  ;;  %v614_v2 = vmul.f32 %v1335_v27, %v600_v60 }
 0x238   :  { %v585_v3 = vadd.f32 %v1329_v17, %v576_v61  ;;  %v577_v4 = vmul.f32 %v914_v62, %v1324_v16 }
 0x239   :  { %v624_v5 = vadd.f32 %v623_v63, %v622_v58  ;;  %v629_v40 = vrot.slane %v628_v0, 1  ;;  %v632_v6 = vadd.f32 %v631_v1, %v613_v57  ;;  %v637_v42 = vrot.slane %v614_v2, 4  ;;  %v915_v45 = vpop.f32.mrb[12].mxu1 }
 0x23a   :  { %v593_v7 = vmul.f32 0.01, %v585_v3  ;;  %v586_v8 = vadd.f32 %v1329_v17, %v577_v4  ;;  %v916_v9 = vpop.f32.mrb[13].mxu1 }
 0x23b   :  { %v630_v10 = vadd.f32 %v629_v40, %v628_v0  ;;  %v633_v11 = vrot.slane %v632_v6, 2  ;;  %v667_v12 = vpack.c.bf16 %v624_v5, %v624_v5  ;;  %v638_v13 = vadd.f32 %v637_v42, %v614_v2  ;;  %v918_v14 = vpop.f32.mrb[14].mxu1 }
 0x23c   :  { %v601_v15 = vmax.f32 %v585_v3, %v593_v7  ;;  %v594_v18 = vmul.f32 0.01, %v586_v8  ;;  %v917_v19 = vadd.f32 %v916_v9, %v915_v45  ;;  %v919_v20 = vpop.f32.mrb[15].mxu1 }
 0x23d   :  { %v634_v21 = vadd.f32 %v633_v11, %v632_v6  ;;  %v668_v22 = vpack.c.bf16 %v630_v10, %v630_v10  ;;  %v639_v23 = vrot.slane %v638_v13, 2  ;;  %v920_v28 = vadd.f32 %v919_v20, %v918_v14 }
 0x23e   :  { %v615_v24 = vmul.f32 %v1335_v27, %v601_v15  ;;  %v602_v25 = vmax.f32 %v586_v8, %v594_v18  ;;  %v578_v26 = vmul.f32 %v917_v19, %v1324_v16  ;;  %v706_v30 = vunpack.c.l.b16 %v667_v12 }
 0x23f   :  { %v635_v29 = vrot.slane %v634_v21, 1  ;;  %v707_v31 = vunpack.c.l.b16 %v668_v22  ;;  %v640_v32 = vadd.f32 %v639_v23, %v638_v13  ;;  %v579_v36 = vmul.f32 %v920_v28, %v1324_v16 }
 0x240   :  { %v643_v33 = vrot.slane %v615_v24, 4  ;;  %v616_v34 = vmul.f32 %v1335_v27, %v602_v25  ;;  %v587_v35 = vadd.f32 %v1329_v17, %v578_v26  ;;  %v872_v25 = vld [vmem:[%s1381_s9] ss:$0 sm:$0xff] }
 0x241   :  { %v636_v37 = vadd.f32 %v635_v29, %v634_v21  ;;  %v641_v38 = vrot.slane %v640_v32, 1  ;;  %v715_v39 = vsel %vm714_vm1, %v707_v31, %v706_v30  ;;  %v588_v46 = vadd.f32 %v1329_v17, %v579_v36 }
 0x242   :  { %v644_v41 = vadd.f32 %v643_v33, %v615_v24  ;;  %v649_v43 = vrot.slane %v616_v34, 4  ;;  %v595_v44 = vmul.f32 0.01, %v587_v35 }
 0x243   :  { %v669_v47 = vpack.c.bf16 %v636_v37, %v636_v37  ;;  %v642_v48 = vadd.f32 %v641_v38, %v640_v32  ;;  %v596_v52 = vmul.f32 0.01, %v588_v46 }
 0x244   :  { %v645_v49 = vrot.slane %v644_v41, 2  ;;  %v650_v50 = vadd.f32 %v649_v43, %v616_v34  ;;  %v603_v51 = vmax.f32 %v587_v35, %v595_v44 }
 0x245   :  { %v708_v53 = vunpack.c.l.b16 %v669_v47  ;;  %v670_v54 = vpack.c.bf16 %v642_v48, %v642_v48  ;;  %v604_v57 = vmax.f32 %v588_v46, %v596_v52 }
 0x246   :  { %v646_v55 = vadd.f32 %v645_v49, %v644_v41  ;;  %v651_v16 = vrot.slane %v650_v50, 2  ;;  %v617_v56 = vmul.f32 %v1335_v27, %v603_v51 }
 0x247   :  { %v709_v58 = vunpack.c.l.b16 %v670_v54  ;;  %v717_v59 = vsel %vm716_vm2, %v708_v53, %v715_v39  ;;  %v618_v62 = vmul.f32 %v1335_v27, %v604_v57 }
 0x248   :  { %v647_v60 = vrot.slane %v646_v55, 1  ;;  %v652_v61 = vadd.f32 %v651_v16, %v650_v50  ;;  %v655_v17 = vrot.slane %v617_v56, 4 }
 0x249   :  { %v719_v63 = vsel %vm718_vm3, %v709_v58, %v717_v59  ;;  %v661_v3 = vrot.slane %v618_v62, 4 }
 0x24a   :  { %v648_v0 = vadd.f32 %v647_v60, %v646_v55  ;;  %v653_v1 = vrot.slane %v652_v61, 1  ;;  %v656_v2 = vadd.f32 %v655_v17, %v617_v56 }
 0x24b   :  { %v662_v6 = vadd.f32 %v661_v3, %v618_v62 }
 0x24c   :  { %v671_v4 = vpack.c.bf16 %v648_v0, %v648_v0  ;;  %v654_v5 = vadd.f32 %v653_v1, %v652_v61  ;;  %v657_v40 = vrot.slane %v656_v2, 2 }
 0x24d   :  { %v663_v8 = vrot.slane %v662_v6, 2 }
 0x24e   :  { %v710_v42 = vunpack.c.l.b16 %v671_v4  ;;  %v672_v45 = vpack.c.bf16 %v654_v5, %v654_v5  ;;  %v658_v7 = vadd.f32 %v657_v40, %v656_v2 }
 0x24f   :  { %v664_v11 = vadd.f32 %v663_v8, %v662_v6 }
 0x250   :  { %v711_v9 = vunpack.c.l.b16 %v672_v45  ;;  %v659_v10 = vrot.slane %v658_v7, 1  ;;  %v721_v12 = vsel %vm720_vm4, %v710_v42, %v719_v63 }
 0x251   :  { %v665_v13 = vrot.slane %v664_v11, 1 }
 0x252   :  { %v660_v27 = vadd.f32 %v659_v10, %v658_v7  ;;  %v723_v14 = vsel %vm722_vm5, %v711_v9, %v721_v12 }
 0x253   :  { %v666_v18 = vadd.f32 %v665_v13, %v664_v11 }
 0x254   :  { %v673_v15 = vpack.c.bf16 %v660_v27, %v660_v27 }
 0x255   :  { %v674_v20 = vpack.c.bf16 %v666_v18, %v666_v18 }
 0x256   :  { %v712_v19 = vunpack.c.l.b16 %v673_v15 }
 0x257   :  { %v713_v21 = vunpack.c.l.b16 %v674_v20 }
 0x258   :  { %v725_v22 = vsel %vm724_vm6, %v712_v19, %v723_v14 }
 0x259   :  { %v727_v23 = vsel %vm726_vm7, %v713_v21, %v725_v22 }
 0x25a   :  { %v728_v24 = vpack.c.b16 %v727_v23, %v727_v23 }
 0x25c   :  { %947 = vmatmul.mubr.bf16.vlgmr.msra.gmra.mrb[16].mxu0 %v728_v24 }
 0x32f   :  { %v812_v26 = vpop.f32.mrb[16].mxu0 }
 0x330   :  { %v813_v28 = vadd.f32 %v872_v25, %v812_v26  ;;  %v948_v29 = vpop.f32.mrb[17].mxu0 }
 0x331   :  { %v815_v30 = vpop.f32.mrb[18].mxu0 }
 0x332   :  { %818 = vst [vmem:[#allocation10] sm:$0xff] %v813_v28  ;;  %v949_v31 = vpop.f32.mrb[19].mxu0 }
 0x333   :  { %1115 = shalt.err (!%p1112_p8)
}
 0x334   :  { %s1116_s9 = scalar_lea.hbm %s1382_s10, 128 }
 0x335   :  { %p1117_p9 = scmp.ne.s32.totalorder %s1382_s10, %s1116_s9  ;;  %p1120_p10 = scmp.lt.u32.totalorder %s1116_s9, %s1382_s10 }
 0x337   :  { %p1122_p11 = pnand %p1120_p10, %p1117_p9 }
 0x339   :  { %1125 = shalt.err (!%p1122_p11)
}
 0x33a   :  { %828 = dma.vmem_to_hbm [thread:$0]  %s826_s11, 128, %s1382_s10, [#allocation4]  }
 0x33b   :  { %1132 = dma.done.wait [#allocation4], 128  }
 0x33c   :  { %1133 = vsyncadd [#allocation4], 4294967168 }
 0x33d   :  { %832 = vsyncpa [#allocation3], 1 }
 0x33e   :  { %833 = vsyncpa [#allocation6], 1 }
 0x33f   :  { %834 = vsyncpa [#allocation9], 1 }
 0x340   :  { %835 = vsyncpa [#allocation4], 1 }

</bundles_post_ra>
